<compile_context>
chip_gen: v7x
topology: tpu7x:2x2x1
jax: 0.10.0
libtpu: 0.0.40
codegen_flags: <defaults>
</compile_context>

<pallas_src>
import functools

import jax
import jax.numpy as jnp
from jax.experimental import pallas as pl
from jax.experimental.pallas import tpu as pltpu


# ----------------------------- Pallas kernel --------------------------------

def _densemask_kernel(x0_ref, x1_ref, x2_ref,
                      wr1_ref, ct1_ref, wr2_ref, ct2_ref, wr3_ref, ct3_ref,
                      b1_ref, o_ref, *, H, W, approx):
    """Fused DenseMask forward for one batch element.

    x*_ref  : (1, Cin*Hin, Win)    activations, rows = (channel, input row)
    wr*_ref : (K*H, Cin*Hin)       folded weights+row-tap selection (stage 1)
    ct*_ref : (K, Win, W)          0/1 column-tap selection matrices (stage 2)
    b1_ref  : (1,) in SMEM         BN-folded proj1 bias
    o_ref   : (1, 1, H, W)         sigmoid(sum) output
    """
    f32 = jnp.float32

    def sigmoid(v):
        e = jnp.exp(-v)                                   # EUP slot
        if approx:
            return pl.reciprocal(1.0 + e, approx=True)    # EUP, off the VPU
        return 1.0 / (1.0 + e)

    def branch(x_ref, wr_ref, ct_ref):
        k = ct_ref.shape[0]
        # stage 1 (MXU): channel contraction + row taps, all K row-blocks at once
        m = jnp.dot(wr_ref[...], x_ref[0], preferred_element_type=f32)  # (K*H, Win)
        # stage 2 (MXU): column taps; 0/1 matrices carry shift/stride/border masks
        acc = jnp.dot(m[0:H, :], ct_ref[0], preferred_element_type=f32)
        for kx in range(1, k):
            acc = acc + jnp.dot(m[kx * H:(kx + 1) * H, :], ct_ref[kx],
                                preferred_element_type=f32)
        return acc                                         # (H, W) f32

    pre1 = branch(x0_ref, wr1_ref, ct1_ref) + b1_ref[0]    # proj1 (conv 3x3 + BN)
    act1 = pre1 * sigmoid(pre1)                            # SiLU
    pre2 = branch(x1_ref, wr2_ref, ct2_ref)                # proj2 (convT 4, s2, p1)
    pre3 = branch(x2_ref, wr3_ref, ct3_ref)                # proj3 (convT 8, s4, p2)

    o_ref[0, 0] = sigmoid(act1 + pre2 + pre3)


# ----------------------------- host-side constant builders ------------------

def _tap_selection(n_out, n_in, k, *, stride, pad, transposed):
    """S[t, o, i] = 1 iff input index i feeds output index o through tap t.

    All shift / stride-phase / border masking for a 1-D conv (cross-correlation)
    or transposed conv is baked into this 0/1 matrix."""
    o = jnp.arange(n_out)[None, :, None]
    i = jnp.arange(n_in)[None, None, :]
    t = jnp.arange(k)[:, None, None]
    if transposed:
        # out[o] += x[i] * w[t]  where  o = i*stride - pad + t
        num = o + pad - t
        valid = (num >= 0) & (num % stride == 0) & (num == stride * i)
    else:
        # out[o] += x[o*stride + t - pad] * w[t]   (zero padding)
        src = o * stride + t - pad
        valid = (src == i) & (src >= 0) & (src < n_in)
    return valid.astype(jnp.float32)                       # (k, n_out, n_in)


def _fold_row_weights(w3, ry):
    """w3: (Cin, K, K) [c, ky, kx];  ry: (K, Hout, Hin) row-tap selection.

    Returns WR (K*Hout, Cin*Hin) with
      WR[kx*Hout + oy, c*Hin + iy] = sum_ky w3[c, ky, kx] * ry[ky, oy, iy]."""
    cin, k, _ = w3.shape
    hout, hin = ry.shape[1], ry.shape[2]
    a = jnp.einsum('cab,aoi->boci', w3, ry)                # (kx, oy, c, iy)
    return a.reshape(k * hout, cin * hin)


# ----------------------------- wrapper ---------------------------------------

def densemask_forward(x0, x1, x2, params, *, operand_dtype=jnp.bfloat16,
                      approx_sigmoid=True):
    """DenseMask forward.  x0:(B,C0,H,W), x1:(B,C1,H/2,W/2), x2:(B,C2,H/4,W/4)."""
    B, C0, H, W = x0.shape
    _, C1, H2, W2 = x1.shape
    _, C2, H4, W4 = x2.shape
    assert (H, W) == (2 * H2, 2 * W2) == (4 * H4, 4 * W4)

    # fold eval-mode BatchNorm into the proj1 conv (single output channel)
    eps = 1e-5
    scale = params["bn_gamma"] / jnp.sqrt(params["bn_var"] + eps)        # (1,)
    w1_eff = params["proj1_w"][0] * scale[0]                             # (C0,3,3)
    b1_eff = (params["bn_beta"] - params["bn_mean"] * scale).reshape(1)  # (1,)

    w2 = params["proj2_w"][:, 0]                                         # (C1,4,4)
    w3 = params["proj3_w"][:, 0]                                         # (C2,8,8)

    # separable 0/1 tap-selection matrices (shift + stride phase + border)
    ry1 = _tap_selection(H, H,  3, stride=1, pad=1, transposed=False)
    cx1 = _tap_selection(W, W,  3, stride=1, pad=1, transposed=False)
    ry2 = _tap_selection(H, H2, 4, stride=2, pad=1, transposed=True)
    cx2 = _tap_selection(W, W2, 4, stride=2, pad=1, transposed=True)
    ry3 = _tap_selection(H, H4, 8, stride=4, pad=2, transposed=True)
    cx3 = _tap_selection(W, W4, 8, stride=4, pad=2, transposed=True)

    # stage-1 constants: channel weights folded with the row taps (bf16 -> MXU)
    wr1 = _fold_row_weights(w1_eff, ry1).astype(operand_dtype)   # (3H, C0*H)
    wr2 = _fold_row_weights(w2, ry2).astype(operand_dtype)       # (4H, C1*H2)
    wr3 = _fold_row_weights(w3, ry3).astype(operand_dtype)       # (8H, C2*H4)

    # stage-2 constants: exact 0/1, tiny -> keep f32 (no extra rounding)
    ct1 = jnp.transpose(cx1, (0, 2, 1))                          # (3, W,  W)
    ct2 = jnp.transpose(cx2, (0, 2, 1))                          # (4, W2, W)
    ct3 = jnp.transpose(cx3, (0, 2, 1))                          # (8, W4, W)

    # activations: (B, Cin*Hin, Win) -- contiguous reshape, bf16 feed to the MXU
    x0v = x0.reshape(B, C0 * H, W).astype(operand_dtype)
    x1v = x1.reshape(B, C1 * H2, W2).astype(operand_dtype)
    x2v = x2.reshape(B, C2 * H4, W4).astype(operand_dtype)

    kernel = functools.partial(_densemask_kernel, H=H, W=W, approx=approx_sigmoid)

    out = pl.pallas_call(
        kernel,
        out_shape=jax.ShapeDtypeStruct((B, 1, H, W), jnp.float32),
        grid_spec=pltpu.PrefetchScalarGridSpec(
            num_scalar_prefetch=0,
            grid=(B,),
            in_specs=[
                # per-batch activations
                pl.BlockSpec((1, C0 * H, W), lambda b: (b, 0, 0)),
                pl.BlockSpec((1, C1 * H2, W2), lambda b: (b, 0, 0)),
                pl.BlockSpec((1, C2 * H4, W4), lambda b: (b, 0, 0)),
                # grid-invariant constants (constant index_map -> DMAed once)
                pl.BlockSpec((3 * H, C0 * H), lambda b: (0, 0)),
                pl.BlockSpec((3, W, W), lambda b: (0, 0, 0)),
                pl.BlockSpec((4 * H, C1 * H2), lambda b: (0, 0)),
                pl.BlockSpec((4, W2, W), lambda b: (0, 0, 0)),
                pl.BlockSpec((8 * H, C2 * H4), lambda b: (0, 0)),
                pl.BlockSpec((8, W4, W), lambda b: (0, 0, 0)),
                # folded BN bias: scalar in SMEM
                pl.BlockSpec(memory_space=pltpu.MemorySpace.SMEM),
            ],
            out_specs=pl.BlockSpec((1, 1, H, W), lambda b: (b, 0, 0, 0)),
        ),
        compiler_params=pltpu.CompilerParams(
            dimension_semantics=("parallel",),
            vmem_limit_bytes=32 * 1024 * 1024,   # per-step footprint is small now
        ),
    )(x0v, x1v, x2v, wr1, ct1, wr2, ct2, wr3, ct3, b1_eff)

    return out


# ----------------------------- pure-JAX reference ----------------------------

def densemask_ref(x0, x1, x2, params):
    eps = 1e-5
    hi = jax.lax.Precision.HIGHEST
    y1 = jax.lax.conv_general_dilated(
        x0, params["proj1_w"], (1, 1), ((1, 1), (1, 1)),
        dimension_numbers=("NCHW", "OIHW", "NCHW"), precision=hi)
    scale = params["bn_gamma"] / jnp.sqrt(params["bn_var"] + eps)
    bias = params["bn_beta"] - params["bn_mean"] * scale
    y1 = y1 * scale[None, :, None, None] + bias[None, :, None, None]
    y1 = y1 * jax.nn.sigmoid(y1)                                         # SiLU

    def convT(x, w, stride, pad):
        # PyTorch ConvTranspose2d (Cin, Cout, k, k) == dilated conv with the
        # spatially-flipped, channel-swapped kernel.
        k = w.shape[2]
        w_conv = jnp.transpose(jnp.flip(w, (2, 3)), (1, 0, 2, 3))
        return jax.lax.conv_general_dilated(
            x, w_conv, (1, 1),
            ((k - 1 - pad, k - 1 - pad), (k - 1 - pad, k - 1 - pad)),
            lhs_dilation=(stride, stride),
            dimension_numbers=("NCHW", "OIHW", "NCHW"), precision=hi)

    y2 = convT(x1, params["proj2_w"], 2, 1)
    y3 = convT(x2, params["proj3_w"], 4, 2)
    return jax.nn.sigmoid(y1 + y2 + y3)


# ----------------------------- params & main ---------------------------------

def init_params(key, c0, c1, c2):
    ks = jax.random.split(key, 7)

    def u(k, shape, bound):
        return jax.random.uniform(k, shape, jnp.float32, -bound, bound)

    p = {}
    p["proj1_w"] = u(ks[0], (1, c0, 3, 3), 1.0 / (c0 * 9) ** 0.5)        # Conv2d OIHW
    p["bn_gamma"] = jax.random.uniform(ks[1], (1,), jnp.float32, 0.5, 1.5)
    p["bn_beta"] = u(ks[2], (1,), 0.1)
    p["bn_mean"] = u(ks[3], (1,), 0.1)
    p["bn_var"] = jax.random.uniform(ks[4], (1,), jnp.float32, 0.5, 1.5)
    p["proj2_w"] = u(ks[5], (c1, 1, 4, 4), 1.0 / (c1 * 16) ** 0.5)       # ConvT (Cin,Cout,k,k)
    p["proj3_w"] = u(ks[6], (c2, 1, 8, 8), 1.0 / (c2 * 64) ** 0.5)
    return p


if __name__ == "__main__":
    B, H, W = 2, 16, 16
    ch = (8, 16, 32)                       # DenseMask(ch=ch): proj1 input = ch[0]//2
    C0, C1, C2 = ch[0] // 2, ch[1], ch[2]

    key = jax.random.PRNGKey(0)
    k0, k1, k2, kp = jax.random.split(key, 4)
    x0 = jax.random.normal(k0, (B, C0, H, W), jnp.float32)            # layers[0][0]
    x1 = jax.random.normal(k1, (B, C1, H // 2, W // 2), jnp.float32)  # layers[1][0]
    x2 = jax.random.normal(k2, (B, C2, H // 4, W // 4), jnp.float32)  # layers[2][0]
    params = init_params(kp, C0, C1, C2)

    ref = densemask_ref(x0, x1, x2, params)

    # exact-mode run (f32 operands, exact sigmoid): validates the math tightly
    fwd_f32 = jax.jit(functools.partial(
        densemask_forward, operand_dtype=jnp.float32, approx_sigmoid=False))
    out_f32 = jax.block_until_ready(fwd_f32(x0, x1, x2, params))
    assert out_f32.shape == (B, 1, H, W)
    assert jnp.allclose(out_f32, ref, atol=1e-3, rtol=1e-3), "f32 mismatch vs reference"

    # deployment mode (bf16 operands on the MXU, approx-reciprocal sigmoid)
    fwd_bf16 = jax.jit(functools.partial(
        densemask_forward, operand_dtype=jnp.bfloat16, approx_sigmoid=True))
    out_bf16 = jax.block_until_ready(fwd_bf16(x0, x1, x2, params))
    assert out_bf16.shape == (B, 1, H, W)
    assert jnp.allclose(out_bf16, ref, atol=2e-2, rtol=2e-2), "bf16 mismatch vs reference"

    print("KERNEL_OK")
</pallas_src>

<mosaic_0001>
module attributes {stable_mosaic.version = 11 : i64} {
  func.func @_densemask_kernel(%arg0: i32, %arg1: memref<1x64x16xf32, #tpu.memory_space<vmem>>, %arg2: memref<1x128x8xf32, #tpu.memory_space<vmem>>, %arg3: memref<1x128x4xf32, #tpu.memory_space<vmem>>, %arg4: memref<48x64xf32, #tpu.memory_space<vmem>>, %arg5: memref<3x16x16xf32, #tpu.memory_space<vmem>>, %arg6: memref<64x128xf32, #tpu.memory_space<vmem>>, %arg7: memref<4x8x16xf32, #tpu.memory_space<vmem>>, %arg8: memref<128x128xf32, #tpu.memory_space<vmem>>, %arg9: memref<8x4x16xf32, #tpu.memory_space<vmem>>, %arg10: memref<1xf32, #tpu.memory_space<smem>>, %arg11: memref<1x1x16x16xf32, #tpu.memory_space<vmem>>) attributes {dimension_semantics = [#tpu.dimension_semantics<parallel>], iteration_bounds = array<i64: 2>, scalar_prefetch = 0 : i64, scratch_operands = 0 : i64, tpu.core_type = #tpu.core_type<tc>, window_params = [{transform_indices = @transform_0, window_bounds = array<i64: 1, 64, 16>}, {transform_indices = @transform_1, window_bounds = array<i64: 1, 128, 8>}, {transform_indices = @transform_2, window_bounds = array<i64: 1, 128, 4>}, {pipeline_mode = #tpu.pipeline_mode<synchronous>, transform_indices = @transform_3, window_bounds = array<i64: 48, 64>}, {pipeline_mode = #tpu.pipeline_mode<synchronous>, transform_indices = @transform_4, window_bounds = array<i64: 3, 16, 16>}, {pipeline_mode = #tpu.pipeline_mode<synchronous>, transform_indices = @transform_5, window_bounds = array<i64: 64, 128>}, {pipeline_mode = #tpu.pipeline_mode<synchronous>, transform_indices = @transform_6, window_bounds = array<i64: 4, 8, 16>}, {pipeline_mode = #tpu.pipeline_mode<synchronous>, transform_indices = @transform_7, window_bounds = array<i64: 128, 128>}, {pipeline_mode = #tpu.pipeline_mode<synchronous>, transform_indices = @transform_8, window_bounds = array<i64: 8, 4, 16>}, {transform_indices = @transform_9, window_bounds = array<i64: 1>}, {transform_indices = @transform_10, window_bounds = array<i64: 1, 1, 16, 16>}]} {
    %c0 = arith.constant 0 : index
    %c0_0 = arith.constant 0 : index
    %0 = vector.load %arg4[%c0, %c0_0] : memref<48x64xf32, #tpu.memory_space<vmem>>, vector<48x64xf32>
    %c0_1 = arith.constant 0 : index
    %c0_2 = arith.constant 0 : index
    %c0_3 = arith.constant 0 : index
    %1 = vector.load %arg1[%c0_1, %c0_2, %c0_3] : memref<1x64x16xf32, #tpu.memory_space<vmem>>, vector<1x64x16xf32>
    %2 = vector.shape_cast %1 : vector<1x64x16xf32> to vector<64x16xf32>
    %cst = arith.constant dense<0.000000e+00> : vector<48x16xf32>
    %3 = tpu.matmul %0, %2, %cst {dimension_numbers = #tpu.dot_dimension_numbers<[1], [0], [0], [1], [0, 0, 1, 1], [], []>} : vector<48x64xf32>, vector<64x16xf32>, vector<48x16xf32> -> vector<48x16xf32>
    %4 = vector.extract_strided_slice %3 {offsets = [0, 0], sizes = [16, 16], strides = [1, 1]} : vector<48x16xf32> to vector<16x16xf32>
    %c0_4 = arith.constant 0 : index
    %c0_5 = arith.constant 0 : index
    %c0_6 = arith.constant 0 : index
    %5 = vector.load %arg5[%c0_4, %c0_5, %c0_6] : memref<3x16x16xf32, #tpu.memory_space<vmem>>, vector<1x16x16xf32>
    %6 = vector.shape_cast %5 : vector<1x16x16xf32> to vector<16x16xf32>
    %cst_7 = arith.constant dense<0.000000e+00> : vector<16x16xf32>
    %7 = tpu.matmul %4, %6, %cst_7 {dimension_numbers = #tpu.dot_dimension_numbers<[1], [0], [0], [1], [0, 0, 1, 1], [], []>} : vector<16x16xf32>, vector<16x16xf32>, vector<16x16xf32> -> vector<16x16xf32>
    %8 = vector.extract_strided_slice %3 {offsets = [16, 0], sizes = [16, 16], strides = [1, 1]} : vector<48x16xf32> to vector<16x16xf32>
    %c1 = arith.constant 1 : index
    %c0_8 = arith.constant 0 : index
    %c0_9 = arith.constant 0 : index
    %9 = vector.load %arg5[%c1, %c0_8, %c0_9] : memref<3x16x16xf32, #tpu.memory_space<vmem>>, vector<1x16x16xf32>
    %10 = vector.shape_cast %9 : vector<1x16x16xf32> to vector<16x16xf32>
    %cst_10 = arith.constant dense<0.000000e+00> : vector<16x16xf32>
    %11 = tpu.matmul %8, %10, %cst_10 {dimension_numbers = #tpu.dot_dimension_numbers<[1], [0], [0], [1], [0, 0, 1, 1], [], []>} : vector<16x16xf32>, vector<16x16xf32>, vector<16x16xf32> -> vector<16x16xf32>
    %12 = arith.addf %7, %11 : vector<16x16xf32>
    %13 = vector.extract_strided_slice %3 {offsets = [32, 0], sizes = [16, 16], strides = [1, 1]} : vector<48x16xf32> to vector<16x16xf32>
    %c2 = arith.constant 2 : index
    %c0_11 = arith.constant 0 : index
    %c0_12 = arith.constant 0 : index
    %14 = vector.load %arg5[%c2, %c0_11, %c0_12] : memref<3x16x16xf32, #tpu.memory_space<vmem>>, vector<1x16x16xf32>
    %15 = vector.shape_cast %14 : vector<1x16x16xf32> to vector<16x16xf32>
    %cst_13 = arith.constant dense<0.000000e+00> : vector<16x16xf32>
    %16 = tpu.matmul %13, %15, %cst_13 {dimension_numbers = #tpu.dot_dimension_numbers<[1], [0], [0], [1], [0, 0, 1, 1], [], []>} : vector<16x16xf32>, vector<16x16xf32>, vector<16x16xf32> -> vector<16x16xf32>
    %17 = arith.addf %12, %16 : vector<16x16xf32>
    %c0_14 = arith.constant 0 : index
    %18 = memref.load %arg10[%c0_14] : memref<1xf32, #tpu.memory_space<smem>>
    %19 = vector.broadcast %18 : f32 to vector<16x16xf32>
    %20 = arith.addf %17, %19 : vector<16x16xf32>
    %cst_15 = arith.constant 0.000000e+00 : f32
    %21 = vector.broadcast %cst_15 : f32 to vector<16x16xf32>
    %22 = arith.subf %21, %20 : vector<16x16xf32>
    %23 = math.exp %22 : vector<16x16xf32>
    %cst_16 = arith.constant 1.000000e+00 : f32
    %24 = vector.broadcast %cst_16 : f32 to vector<16x16xf32>
    %25 = arith.addf %24, %23 : vector<16x16xf32>
    %cst_17 = arith.constant 1.000000e+00 : f32
    %26 = vector.broadcast %cst_17 : f32 to vector<16x16xf32>
    %27 = arith.divf %26, %25 : vector<16x16xf32>
    %28 = arith.mulf %20, %27 : vector<16x16xf32>
    %c0_18 = arith.constant 0 : index
    %c0_19 = arith.constant 0 : index
    %29 = vector.load %arg6[%c0_18, %c0_19] : memref<64x128xf32, #tpu.memory_space<vmem>>, vector<64x128xf32>
    %c0_20 = arith.constant 0 : index
    %c0_21 = arith.constant 0 : index
    %c0_22 = arith.constant 0 : index
    %30 = vector.load %arg2[%c0_20, %c0_21, %c0_22] : memref<1x128x8xf32, #tpu.memory_space<vmem>>, vector<1x128x8xf32>
    %31 = vector.shape_cast %30 : vector<1x128x8xf32> to vector<128x8xf32>
    %cst_23 = arith.constant dense<0.000000e+00> : vector<64x8xf32>
    %32 = tpu.matmul %29, %31, %cst_23 {dimension_numbers = #tpu.dot_dimension_numbers<[1], [0], [0], [1], [0, 0, 1, 1], [], []>} : vector<64x128xf32>, vector<128x8xf32>, vector<64x8xf32> -> vector<64x8xf32>
    %33 = vector.extract_strided_slice %32 {offsets = [0, 0], sizes = [16, 8], strides = [1, 1]} : vector<64x8xf32> to vector<16x8xf32>
    %c0_24 = arith.constant 0 : index
    %c0_25 = arith.constant 0 : index
    %c0_26 = arith.constant 0 : index
    %34 = vector.load %arg7[%c0_24, %c0_25, %c0_26] : memref<4x8x16xf32, #tpu.memory_space<vmem>>, vector<1x8x16xf32>
    %35 = vector.shape_cast %34 : vector<1x8x16xf32> to vector<8x16xf32>
    %cst_27 = arith.constant dense<0.000000e+00> : vector<16x16xf32>
    %36 = tpu.matmul %33, %35, %cst_27 {dimension_numbers = #tpu.dot_dimension_numbers<[1], [0], [0], [1], [0, 0, 1, 1], [], []>} : vector<16x8xf32>, vector<8x16xf32>, vector<16x16xf32> -> vector<16x16xf32>
    %37 = vector.extract_strided_slice %32 {offsets = [16, 0], sizes = [16, 8], strides = [1, 1]} : vector<64x8xf32> to vector<16x8xf32>
    %c1_28 = arith.constant 1 : index
    %c0_29 = arith.constant 0 : index
    %c0_30 = arith.constant 0 : index
    %38 = vector.load %arg7[%c1_28, %c0_29, %c0_30] : memref<4x8x16xf32, #tpu.memory_space<vmem>>, vector<1x8x16xf32>
    %39 = vector.shape_cast %38 : vector<1x8x16xf32> to vector<8x16xf32>
    %cst_31 = arith.constant dense<0.000000e+00> : vector<16x16xf32>
    %40 = tpu.matmul %37, %39, %cst_31 {dimension_numbers = #tpu.dot_dimension_numbers<[1], [0], [0], [1], [0, 0, 1, 1], [], []>} : vector<16x8xf32>, vector<8x16xf32>, vector<16x16xf32> -> vector<16x16xf32>
    %41 = arith.addf %36, %40 : vector<16x16xf32>
    %42 = vector.extract_strided_slice %32 {offsets = [32, 0], sizes = [16, 8], strides = [1, 1]} : vector<64x8xf32> to vector<16x8xf32>
    %c2_32 = arith.constant 2 : index
    %c0_33 = arith.constant 0 : index
    %c0_34 = arith.constant 0 : index
    %43 = vector.load %arg7[%c2_32, %c0_33, %c0_34] : memref<4x8x16xf32, #tpu.memory_space<vmem>>, vector<1x8x16xf32>
    %44 = vector.shape_cast %43 : vector<1x8x16xf32> to vector<8x16xf32>
    %cst_35 = arith.constant dense<0.000000e+00> : vector<16x16xf32>
    %45 = tpu.matmul %42, %44, %cst_35 {dimension_numbers = #tpu.dot_dimension_numbers<[1], [0], [0], [1], [0, 0, 1, 1], [], []>} : vector<16x8xf32>, vector<8x16xf32>, vector<16x16xf32> -> vector<16x16xf32>
    %46 = arith.addf %41, %45 : vector<16x16xf32>
    %47 = vector.extract_strided_slice %32 {offsets = [48, 0], sizes = [16, 8], strides = [1, 1]} : vector<64x8xf32> to vector<16x8xf32>
    %c3 = arith.constant 3 : index
    %c0_36 = arith.constant 0 : index
    %c0_37 = arith.constant 0 : index
    %48 = vector.load %arg7[%c3, %c0_36, %c0_37] : memref<4x8x16xf32, #tpu.memory_space<vmem>>, vector<1x8x16xf32>
    %49 = vector.shape_cast %48 : vector<1x8x16xf32> to vector<8x16xf32>
    %cst_38 = arith.constant dense<0.000000e+00> : vector<16x16xf32>
    %50 = tpu.matmul %47, %49, %cst_38 {dimension_numbers = #tpu.dot_dimension_numbers<[1], [0], [0], [1], [0, 0, 1, 1], [], []>} : vector<16x8xf32>, vector<8x16xf32>, vector<16x16xf32> -> vector<16x16xf32>
    %51 = arith.addf %46, %50 : vector<16x16xf32>
    %c0_39 = arith.constant 0 : index
    %c0_40 = arith.constant 0 : index
    %52 = vector.load %arg8[%c0_39, %c0_40] : memref<128x128xf32, #tpu.memory_space<vmem>>, vector<128x128xf32>
    %c0_41 = arith.constant 0 : index
    %c0_42 = arith.constant 0 : index
    %c0_43 = arith.constant 0 : index
    %53 = vector.load %arg3[%c0_41, %c0_42, %c0_43] : memref<1x128x4xf32, #tpu.memory_space<vmem>>, vector<1x128x4xf32>
    %54 = vector.shape_cast %53 : vector<1x128x4xf32> to vector<128x4xf32>
    %cst_44 = arith.constant dense<0.000000e+00> : vector<128x4xf32>
    %55 = tpu.matmul %52, %54, %cst_44 {dimension_numbers = #tpu.dot_dimension_numbers<[1], [0], [0], [1], [0, 0, 1, 1], [], []>} : vector<128x128xf32>, vector<128x4xf32>, vector<128x4xf32> -> vector<128x4xf32>
    %56 = vector.extract_strided_slice %55 {offsets = [0, 0], sizes = [16, 4], strides = [1, 1]} : vector<128x4xf32> to vector<16x4xf32>
    %c0_45 = arith.constant 0 : index
    %c0_46 = arith.constant 0 : index
    %c0_47 = arith.constant 0 : index
    %57 = vector.load %arg9[%c0_45, %c0_46, %c0_47] : memref<8x4x16xf32, #tpu.memory_space<vmem>>, vector<1x4x16xf32>
    %58 = vector.shape_cast %57 : vector<1x4x16xf32> to vector<4x16xf32>
    %cst_48 = arith.constant dense<0.000000e+00> : vector<16x16xf32>
    %59 = tpu.matmul %56, %58, %cst_48 {dimension_numbers = #tpu.dot_dimension_numbers<[1], [0], [0], [1], [0, 0, 1, 1], [], []>} : vector<16x4xf32>, vector<4x16xf32>, vector<16x16xf32> -> vector<16x16xf32>
    %60 = vector.extract_strided_slice %55 {offsets = [16, 0], sizes = [16, 4], strides = [1, 1]} : vector<128x4xf32> to vector<16x4xf32>
    %c1_49 = arith.constant 1 : index
    %c0_50 = arith.constant 0 : index
    %c0_51 = arith.constant 0 : index
    %61 = vector.load %arg9[%c1_49, %c0_50, %c0_51] : memref<8x4x16xf32, #tpu.memory_space<vmem>>, vector<1x4x16xf32>
    %62 = vector.shape_cast %61 : vector<1x4x16xf32> to vector<4x16xf32>
    %cst_52 = arith.constant dense<0.000000e+00> : vector<16x16xf32>
    %63 = tpu.matmul %60, %62, %cst_52 {dimension_numbers = #tpu.dot_dimension_numbers<[1], [0], [0], [1], [0, 0, 1, 1], [], []>} : vector<16x4xf32>, vector<4x16xf32>, vector<16x16xf32> -> vector<16x16xf32>
    %64 = arith.addf %59, %63 : vector<16x16xf32>
    %65 = vector.extract_strided_slice %55 {offsets = [32, 0], sizes = [16, 4], strides = [1, 1]} : vector<128x4xf32> to vector<16x4xf32>
    %c2_53 = arith.constant 2 : index
    %c0_54 = arith.constant 0 : index
    %c0_55 = arith.constant 0 : index
    %66 = vector.load %arg9[%c2_53, %c0_54, %c0_55] : memref<8x4x16xf32, #tpu.memory_space<vmem>>, vector<1x4x16xf32>
    %67 = vector.shape_cast %66 : vector<1x4x16xf32> to vector<4x16xf32>
    %cst_56 = arith.constant dense<0.000000e+00> : vector<16x16xf32>
    %68 = tpu.matmul %65, %67, %cst_56 {dimension_numbers = #tpu.dot_dimension_numbers<[1], [0], [0], [1], [0, 0, 1, 1], [], []>} : vector<16x4xf32>, vector<4x16xf32>, vector<16x16xf32> -> vector<16x16xf32>
    %69 = arith.addf %64, %68 : vector<16x16xf32>
    %70 = vector.extract_strided_slice %55 {offsets = [48, 0], sizes = [16, 4], strides = [1, 1]} : vector<128x4xf32> to vector<16x4xf32>
    %c3_57 = arith.constant 3 : index
    %c0_58 = arith.constant 0 : index
    %c0_59 = arith.constant 0 : index
    %71 = vector.load %arg9[%c3_57, %c0_58, %c0_59] : memref<8x4x16xf32, #tpu.memory_space<vmem>>, vector<1x4x16xf32>
    %72 = vector.shape_cast %71 : vector<1x4x16xf32> to vector<4x16xf32>
    %cst_60 = arith.constant dense<0.000000e+00> : vector<16x16xf32>
    %73 = tpu.matmul %70, %72, %cst_60 {dimension_numbers = #tpu.dot_dimension_numbers<[1], [0], [0], [1], [0, 0, 1, 1], [], []>} : vector<16x4xf32>, vector<4x16xf32>, vector<16x16xf32> -> vector<16x16xf32>
    %74 = arith.addf %69, %73 : vector<16x16xf32>
    %75 = vector.extract_strided_slice %55 {offsets = [64, 0], sizes = [16, 4], strides = [1, 1]} : vector<128x4xf32> to vector<16x4xf32>
    %c4 = arith.constant 4 : index
    %c0_61 = arith.constant 0 : index
    %c0_62 = arith.constant 0 : index
    %76 = vector.load %arg9[%c4, %c0_61, %c0_62] : memref<8x4x16xf32, #tpu.memory_space<vmem>>, vector<1x4x16xf32>
    %77 = vector.shape_cast %76 : vector<1x4x16xf32> to vector<4x16xf32>
    %cst_63 = arith.constant dense<0.000000e+00> : vector<16x16xf32>
    %78 = tpu.matmul %75, %77, %cst_63 {dimension_numbers = #tpu.dot_dimension_numbers<[1], [0], [0], [1], [0, 0, 1, 1], [], []>} : vector<16x4xf32>, vector<4x16xf32>, vector<16x16xf32> -> vector<16x16xf32>
    %79 = arith.addf %74, %78 : vector<16x16xf32>
    %80 = vector.extract_strided_slice %55 {offsets = [80, 0], sizes = [16, 4], strides = [1, 1]} : vector<128x4xf32> to vector<16x4xf32>
    %c5 = arith.constant 5 : index
    %c0_64 = arith.constant 0 : index
    %c0_65 = arith.constant 0 : index
    %81 = vector.load %arg9[%c5, %c0_64, %c0_65] : memref<8x4x16xf32, #tpu.memory_space<vmem>>, vector<1x4x16xf32>
    %82 = vector.shape_cast %81 : vector<1x4x16xf32> to vector<4x16xf32>
    %cst_66 = arith.constant dense<0.000000e+00> : vector<16x16xf32>
    %83 = tpu.matmul %80, %82, %cst_66 {dimension_numbers = #tpu.dot_dimension_numbers<[1], [0], [0], [1], [0, 0, 1, 1], [], []>} : vector<16x4xf32>, vector<4x16xf32>, vector<16x16xf32> -> vector<16x16xf32>
    %84 = arith.addf %79, %83 : vector<16x16xf32>
    %85 = vector.extract_strided_slice %55 {offsets = [96, 0], sizes = [16, 4], strides = [1, 1]} : vector<128x4xf32> to vector<16x4xf32>
    %c6 = arith.constant 6 : index
    %c0_67 = arith.constant 0 : index
    %c0_68 = arith.constant 0 : index
    %86 = vector.load %arg9[%c6, %c0_67, %c0_68] : memref<8x4x16xf32, #tpu.memory_space<vmem>>, vector<1x4x16xf32>
    %87 = vector.shape_cast %86 : vector<1x4x16xf32> to vector<4x16xf32>
    %cst_69 = arith.constant dense<0.000000e+00> : vector<16x16xf32>
    %88 = tpu.matmul %85, %87, %cst_69 {dimension_numbers = #tpu.dot_dimension_numbers<[1], [0], [0], [1], [0, 0, 1, 1], [], []>} : vector<16x4xf32>, vector<4x16xf32>, vector<16x16xf32> -> vector<16x16xf32>
    %89 = arith.addf %84, %88 : vector<16x16xf32>
    %90 = vector.extract_strided_slice %55 {offsets = [112, 0], sizes = [16, 4], strides = [1, 1]} : vector<128x4xf32> to vector<16x4xf32>
    %c7 = arith.constant 7 : index
    %c0_70 = arith.constant 0 : index
    %c0_71 = arith.constant 0 : index
    %91 = vector.load %arg9[%c7, %c0_70, %c0_71] : memref<8x4x16xf32, #tpu.memory_space<vmem>>, vector<1x4x16xf32>
    %92 = vector.shape_cast %91 : vector<1x4x16xf32> to vector<4x16xf32>
    %cst_72 = arith.constant dense<0.000000e+00> : vector<16x16xf32>
    %93 = tpu.matmul %90, %92, %cst_72 {dimension_numbers = #tpu.dot_dimension_numbers<[1], [0], [0], [1], [0, 0, 1, 1], [], []>} : vector<16x4xf32>, vector<4x16xf32>, vector<16x16xf32> -> vector<16x16xf32>
    %94 = arith.addf %89, %93 : vector<16x16xf32>
    %95 = arith.addf %28, %51 : vector<16x16xf32>
    %96 = arith.addf %95, %94 : vector<16x16xf32>
    %cst_73 = arith.constant 0.000000e+00 : f32
    %97 = vector.broadcast %cst_73 : f32 to vector<16x16xf32>
    %98 = arith.subf %97, %96 : vector<16x16xf32>
    %99 = math.exp %98 : vector<16x16xf32>
    %cst_74 = arith.constant 1.000000e+00 : f32
    %100 = vector.broadcast %cst_74 : f32 to vector<16x16xf32>
    %101 = arith.addf %100, %99 : vector<16x16xf32>
    %cst_75 = arith.constant 1.000000e+00 : f32
    %102 = vector.broadcast %cst_75 : f32 to vector<16x16xf32>
    %103 = arith.divf %102, %101 : vector<16x16xf32>
    %c0_76 = arith.constant 0 : index
    %c0_77 = arith.constant 0 : index
    %c0_78 = arith.constant 0 : index
    %c0_79 = arith.constant 0 : index
    %104 = vector.load %arg11[%c0_76, %c0_77, %c0_78, %c0_79] : memref<1x1x16x16xf32, #tpu.memory_space<vmem>>, vector<1x1x16x16xf32>
    %105 = vector.shape_cast %104 : vector<1x1x16x16xf32> to vector<16x16xf32>
    %106 = vector.shape_cast %103 : vector<16x16xf32> to vector<1x1x16x16xf32>
    tpu.vector_store %arg11[%c0_76, %c0_77, %c0_78, %c0_79], %106 {strides = array<i32>} : memref<1x1x16x16xf32, #tpu.memory_space<vmem>>, vector<1x1x16x16xf32>,
    return
  }
  func.func @transform_0(%arg0: i32) -> (i32, i32, i32) {
    %c0_i32 = arith.constant 0 : i32
    %c0_i32_0 = arith.constant 0 : i32
    %c0_i32_1 = arith.constant 0 : i32
    return %arg0, %c0_i32, %c0_i32_0 : i32, i32, i32
  }
  func.func @transform_1(%arg0: i32) -> (i32, i32, i32) {
    %c0_i32 = arith.constant 0 : i32
    %c0_i32_0 = arith.constant 0 : i32
    %c0_i32_1 = arith.constant 0 : i32
    return %arg0, %c0_i32, %c0_i32_0 : i32, i32, i32
  }
  func.func @transform_2(%arg0: i32) -> (i32, i32, i32) {
    %c0_i32 = arith.constant 0 : i32
    %c0_i32_0 = arith.constant 0 : i32
    %c0_i32_1 = arith.constant 0 : i32
    return %arg0, %c0_i32, %c0_i32_0 : i32, i32, i32
  }
  func.func @transform_3(%arg0: i32) -> (i32, i32) {
    %c0_i32 = arith.constant 0 : i32
    %c0_i32_0 = arith.constant 0 : i32
    %c0_i32_1 = arith.constant 0 : i32
    return %c0_i32, %c0_i32_0 : i32, i32
  }
  func.func @transform_4(%arg0: i32) -> (i32, i32, i32) {
    %c0_i32 = arith.constant 0 : i32
    %c0_i32_0 = arith.constant 0 : i32
    %c0_i32_1 = arith.constant 0 : i32
    %c0_i32_2 = arith.constant 0 : i32
    return %c0_i32, %c0_i32_0, %c0_i32_1 : i32, i32, i32
  }
  func.func @transform_5(%arg0: i32) -> (i32, i32) {
    %c0_i32 = arith.constant 0 : i32
    %c0_i32_0 = arith.constant 0 : i32
    %c0_i32_1 = arith.constant 0 : i32
    return %c0_i32, %c0_i32_0 : i32, i32
  }
  func.func @transform_6(%arg0: i32) -> (i32, i32, i32) {
    %c0_i32 = arith.constant 0 : i32
    %c0_i32_0 = arith.constant 0 : i32
    %c0_i32_1 = arith.constant 0 : i32
    %c0_i32_2 = arith.constant 0 : i32
    return %c0_i32, %c0_i32_0, %c0_i32_1 : i32, i32, i32
  }
  func.func @transform_7(%arg0: i32) -> (i32, i32) {
    %c0_i32 = arith.constant 0 : i32
    %c0_i32_0 = arith.constant 0 : i32
    %c0_i32_1 = arith.constant 0 : i32
    return %c0_i32, %c0_i32_0 : i32, i32
  }
  func.func @transform_8(%arg0: i32) -> (i32, i32, i32) {
    %c0_i32 = arith.constant 0 : i32
    %c0_i32_0 = arith.constant 0 : i32
    %c0_i32_1 = arith.constant 0 : i32
    %c0_i32_2 = arith.constant 0 : i32
    return %c0_i32, %c0_i32_0, %c0_i32_1 : i32, i32, i32
  }
  func.func @transform_9(%arg0: i32) -> i32 {
    %c0_i32 = arith.constant 0 : i32
    %c0_i32_0 = arith.constant 0 : i32
    return %c0_i32 : i32
  }
  func.func @transform_10(%arg0: i32) -> (i32, i32, i32, i32) {
    %c0_i32 = arith.constant 0 : i32
    %c0_i32_0 = arith.constant 0 : i32
    %c0_i32_1 = arith.constant 0 : i32
    %c0_i32_2 = arith.constant 0 : i32
    return %arg0, %c0_i32, %c0_i32_0, %c0_i32_1 : i32, i32, i32, i32
  }
}

</mosaic_0001>

<bundles_post_ra>
// kernel: densemask_forward.1
= control target key start
LH: loop header
LB: loop body
LE: loop exit
PB: predicated region body
PF: predicated region fallthrough
CT: control target
= control target key end

     0   :  { %s3315_s0 = inlined_call_operand.vmem [shape: f32[2,64,16], index: 0, kind: input, shape index: {}]   ;;  %s3316_s1 = inlined_call_operand.vmem [shape: f32[2,128,8], index: 1, kind: input, shape index: {}]   ;;  %s3317_s2 = inlined_call_operand.vmem [shape: f32[2,128,4], index: 2, kind: input, shape index: {}]   ;;  %s3318_s3 = inlined_call_operand.vmem [shape: f32[48,64], index: 3, kind: input, shape index: {}]   ;;  %s3319_s4 = inlined_call_operand.vmem [shape: f32[3,16,16], index: 4, kind: input, shape index: {}]   ;;  %s3320_s5 = inlined_call_operand.vmem [shape: f32[64,128], index: 5, kind: input, shape index: {}]   ;;  %s3321_s6 = inlined_call_operand.vmem [shape: f32[4,8,16], index: 6, kind: input, shape index: {}]   ;;  %s3322_s7 = inlined_call_operand.vmem [shape: f32[128,128], index: 7, kind: input, shape index: {}]   ;;  %s3323_s8 = inlined_call_operand.vmem [shape: f32[8,4,16], index: 8, kind: input, shape index: {}]   ;;  %s3324_s9 = inlined_call_operand.<no memory space> [shape: f32[1], index: 9, kind: input, shape index: {}]   ;;  %s3325_s10 = inlined_call_operand.hbm [shape: f32[2,1,16,16], index: 10, kind: output, shape index: {}]  }
   0x1   :  { %15 = sst [smem:[#allocation2]] %s3324_s9 }
   0x2   :  { %16 = vsyncpa [#allocation4], 0 }
   0x3   :  { %18 = vsyncpa [#allocation4 + $0x1], 0  ;;  %s2964_s15 = smov 0   ;;  %s2966_s16 = smov 0  }
   0x4   :  { %s2968_s17 = smov 0   ;;  %s2970_s18 = smov 0  }
   0x5 LB: > { %s2985_s9 = sadd.s32 4294967295, %s2901_s18   ;;  %s2260_s19 = sadd.s32 4294967294, %s2901_s18   ;;  %s2901_s18 = sphi %s2970_s18, %s3331_s18   ;;  %s2897_s17 = sphi %s2968_s17, %s3330_s17   ;;  %s2893_s16 = sphi %s2966_s16, %s3329_s16   ;;  %s2889_s15 = sphi %s2964_s15, %s3328_s15  }
   0x6   : > { %s2989_s20 = sadd.s32 1, %s2901_s18   ;;  %s256_s21 = sadd.s32 1, %s2897_s17 }
   0x7   : > { %s253_s22 = ssub.s32 %s2901_s18, %s2989_s20  ;;  %p266_p0 = scmp.ne.s32.totalorder %s2897_s17, %s2893_s16 }
   0x8   : > { %p254_p1 = scmp.eq.s32.totalorder %s253_s22, 0  ;;  %p267_p2 = scmp.eq.s32.totalorder %s2985_s9, 1 }
   0x9   : > { %p272_p3 = scmp.ne.s32.totalorder %s2893_s16, %s2889_s15  ;;  %p273_p4 = scmp.eq.s32.totalorder %s2260_s19, 1 }
   0xa   : > { %s3000_s23 = scalar_select %p254_p1, %s2897_s17, %s256_s21  }
   0xb   : > { %p3002_p5 = por %p267_p2, %p266_p0  ;;  %p3006_p6 = por %p273_p4, %p272_p3 }
   0xc   : > { %p2263_p7 = scmp.ge.s32.totalorder %s2901_s18, 1  ;;  %p336_p8 = scmp.lt.s32.totalorder %s2901_s18, 3 }
   0xe   : > { %p337_p9 = pnand %p2263_p7, %p336_p8 }
   0xf   : > { %p384_p10 = scmp.lt.s32.totalorder (!%p337_p9), %s2985_s9, 1  ;;  %v399_v0 = vld [vmem:[%s3318_s3] sm:$0xff] (!%p337_p9)  ;;  %vm413_vm0 = vcmask (!%p337_p9), 523264   ;;  %v400_v31 = vld [vmem:[%s3318_s3 + $0x8] sm:$0xff] (!%p337_p9)  ;;  %v401_v32 = vld [vmem:[%s3318_s3 + $0x10] sm:$0xff] (!%p337_p9)  ;;  %vm532_vm1 = vcmask (!%p337_p9), 130048  }
  0x10   : > { %340 = sbr.rel (%p337_p9) target bundleno = 630 (0x276), region = 60  ;;  %2472 = vmatprep.mubr.msk.f32.mxu0 (!%p337_p9), %vm413_vm0, %v399_v0  ;;  %v799_v1 = vld [vmem:[%s3320_s5] sm:$0xff] (!%p337_p9)  ;;  %v2277_v33 = vld [vmem:[%s3319_s4 + $0x10] sm:$0xff] (!%p337_p9)  ;;  %v2278_v34 = vld [vmem:[%s3319_s4 + $0x18] sm:$0xff] (!%p337_p9)  ;;  %vm931_vm2 = vcmask (!%p337_p9), 64512   ;;  %vm1451_vm3 = vcmask (!%p337_p9), 1043456  }
  0x11   : > { %2534 = vmatprep.mubr.f32.mxu1 (!%p337_p9), %v799_v1  ;;  %v2678_v36 = vpack.c.bf16 (!%p337_p9), %v2278_v34, %v2277_v33  ;;  %v402_v39 = vld [vmem:[%s3318_s3 + $0x18] sm:$0xff] (!%p337_p9)  ;;  %v403_v40 = vld [vmem:[%s3318_s3 + $0x20] sm:$0xff] (!%p337_p9)  ;;  %v404_v44 = vld [vmem:[%s3318_s3 + $0x28] sm:$0xff] (!%p337_p9)  ;;  %vm1444_vm4 = vcmask (!%p337_p9), 31744   ;;  %s381_s13 = sand.u32 (!%p337_p9), 1, %s2893_s16   ;;  %s2337_s21 = sshll.u32 (!%p337_p9), %s2985_s9, 8 }
  0x12   : > { %v800_v51 = vld [vmem:[%s3320_s5 + $0x8] sm:$0xff] (!%p337_p9)  ;;  %v801_v52 = vld [vmem:[%s3320_s5 + $0x10] sm:$0xff] (!%p337_p9)  ;;  %v802_v56 = vld [vmem:[%s3320_s5 + $0x18] sm:$0xff] (!%p337_p9)  ;;  %s3268_s22 = scalar_lea.hbm (!%p337_p9), %s3325_s10, %s2337_s21  ;;  %s3274_s27 = scalar_lea.sflag (!%p337_p9), [#allocation4], %s381_s13 }
  0x13   : > { %v803_v58 = vld [vmem:[%s3320_s5 + $0x20] sm:$0xff] (!%p337_p9)  ;;  %v804_v61 = vld [vmem:[%s3320_s5 + $0x28] sm:$0xff] (!%p337_p9)  ;;  %v805_v63 = vld [vmem:[%s3320_s5 + $0x30] sm:$0xff] (!%p337_p9)  ;;  %s2903_s28 = smov (!%p337_p9), [#allocation3]  }
  0x14   : > { %v2283_v34 = vld [vmem:[%s3319_s4 + $0x20] sm:$0xff] (!%p337_p9)  ;;  %s2843_s29 = sshll.u32 (!%p337_p9), %s2903_s28, 4  ;;  %s2844_s29 = int_to_ptr.vmem [resolvable:$false] %s2843_s29 }
  0x17   : > { %s3021_s30 = scalar_select %p384_p10, %s2985_s9, 1 }
  0x19   : > { %s2334_s11 = sshll.u32 %s3021_s30, 6  ;;  %s2335_s12 = sshll.u32 %s3021_s30, 7 }
  0x1a   : > { %s388_s19 = scalar_lea.vmem %s3315_s0, %s2334_s11  ;;  %s3033_s26 = scalar_lea.vmem %s3316_s1, %s2335_s12 }
  0x1b   : > { %v405_v2 = vld [vmem:[%s388_s19] sm:$0xff]  ;;  %v406_v3 = vld [vmem:[%s388_s19 + $0x8] sm:$0xff]  ;;  %v407_v7 = vld [vmem:[%s388_s19 + $0x10] sm:$0xff]  ;;  %s3077_s14 = scalar_lea.vmem %s3317_s2, %s2335_s12  ;;  %s781_s11 = sld [smem:[#allocation2]] }
  0x1c   : > { %v807_v4 = vld [vmem:[%s3033_s26] sm:$0xff]  ;;  %v2662_v5 = vpack.c.bf16 %v406_v3, %v405_v2  ;;  %v808_v6 = vld [vmem:[%s3033_s26 + $0x8] sm:$0xff]  ;;  %v408_v8 = vld [vmem:[%s388_s19 + $0x18] sm:$0xff] }
  0x1d   : > { %v2690_v9 = vpack.c.bf16 %v808_v6, %v807_v4  ;;  %v2666_v10 = vpack.c.bf16 %v408_v8, %v407_v7  ;;  %v809_v11 = vld [vmem:[%s3033_s26 + $0x10] sm:$0xff]  ;;  %v810_v12 = vld [vmem:[%s3033_s26 + $0x18] sm:$0xff]  ;;  %v409_v13 = vld [vmem:[%s388_s19 + $0x20] sm:$0xff] }
  0x1e   : > { %2663 = vmatprep.subr.bf16.mxu0 %v2662_v5  ;;  %v2694_v14 = vpack.c.bf16 %v810_v12, %v809_v11  ;;  %v410_v15 = vld [vmem:[%s388_s19 + $0x28] sm:$0xff]  ;;  %v811_v16 = vld [vmem:[%s3033_s26 + $0x20] sm:$0xff]  ;;  %v411_v20 = vld [vmem:[%s388_s19 + $0x30] sm:$0xff] }
  0x1f   : > { %v812_v17 = vld [vmem:[%s3033_s26 + $0x28] sm:$0xff]  ;;  %2665 = vmatpush3.bf16.msra.mxu0 %v2662_v5  ;;  %2691 = vmatprep.subr.bf16.mxu1 %v2690_v9  ;;  %v2670_v18 = vpack.c.bf16 %v410_v15, %v409_v13  ;;  %v412_v21 = vld [vmem:[%s388_s19 + $0x38] sm:$0xff]  ;;  %v813_v22 = vld [vmem:[%s3033_s26 + $0x30] sm:$0xff]  ;;  %s2264_s19 = sshll.u32 %s381_s13, 4 }
  0x20   : > { %2667 = vmatprep.subr.bf16.mxu0 %v2666_v10  ;;  %2693 = vmatpush3.bf16.msra.mxu1 %v2690_v9  ;;  %v2698_v19 = vpack.c.bf16 %v812_v17, %v811_v16  ;;  %v814_v23 = vld [vmem:[%s3033_s26 + $0x38] sm:$0xff]  ;;  %v2674_v24 = vpack.c.bf16 %v412_v21, %v411_v20  ;;  %v815_v26 = vld [vmem:[%s3033_s26 + $0x40] sm:$0xff]  ;;  %v816_v27 = vld [vmem:[%s3033_s26 + $0x48] sm:$0xff] }
  0x21   : > { %2695 = vmatprep.subr.bf16.mxu1 %v2694_v14  ;;  %v2702_v25 = vpack.c.bf16 %v814_v23, %v813_v22  ;;  %v2706_v28 = vpack.c.bf16 %v816_v27, %v815_v26  ;;  %v817_v29 = vld [vmem:[%s3033_s26 + $0x50] sm:$0xff]  ;;  %v818_v30 = vld [vmem:[%s3033_s26 + $0x58] sm:$0xff]  ;;  %v819_v37 = vld [vmem:[%s3033_s26 + $0x60] sm:$0xff] }
  0x22   : > { %v2710_v35 = vpack.c.bf16 %v818_v30, %v817_v29  ;;  %v820_v38 = vld [vmem:[%s3033_s26 + $0x68] sm:$0xff]  ;;  %v821_v42 = vld [vmem:[%s3033_s26 + $0x70] sm:$0xff]  ;;  %v822_v43 = vld [vmem:[%s3033_s26 + $0x78] sm:$0xff] }
  0x23   : > { %2669 = vmatpush3.bf16.msra.mxu0 %v2666_v10  ;;  %v2714_v41 = vpack.c.bf16 %v820_v38, %v819_v37  ;;  %v2718_v45 = vpack.c.bf16 %v822_v43, %v821_v42  ;;  %v1280_v46 = vld [vmem:[%s3077_s14] sm:$0xff]  ;;  %v1281_v47 = vld [vmem:[%s3077_s14 + $0x8] sm:$0xff]  ;;  %v1282_v49 = vld [vmem:[%s3077_s14 + $0x10] sm:$0xff] }
  0x24   : > { %2671 = vmatprep.subr.bf16.mxu0 %v2670_v18  ;;  %2697 = vmatpush3.bf16.msra.mxu1 %v2694_v14  ;;  %v2722_v48 = vpack.c.bf16 %v1281_v47, %v1280_v46  ;;  %v1283_v50 = vld [vmem:[%s3077_s14 + $0x18] sm:$0xff]  ;;  %v1284_v54 = vld [vmem:[%s3077_s14 + $0x20] sm:$0xff]  ;;  %v1285_v55 = vld [vmem:[%s3077_s14 + $0x28] sm:$0xff] }
  0x25   : > { %2699 = vmatprep.subr.bf16.mxu1 %v2698_v19  ;;  %v2726_v53 = vpack.c.bf16 %v1283_v50, %v1282_v49  ;;  %v2730_v57 = vpack.c.bf16 %v1285_v55, %v1284_v54  ;;  %v1286_v59 = vld [vmem:[%s3077_s14 + $0x30] sm:$0xff]  ;;  %v1287_v60 = vld [vmem:[%s3077_s14 + $0x38] sm:$0xff]  ;;  %v1288_v0 = vld [vmem:[%s3077_s14 + $0x40] sm:$0xff] }
  0x26   : > { %v2734_v62 = vpack.c.bf16 %v1287_v60, %v1286_v59  ;;  %v1289_v1 = vld [vmem:[%s3077_s14 + $0x48] sm:$0xff]  ;;  %v806_v2 = vld [vmem:[%s3320_s5 + $0x38] sm:$0xff]  ;;  %v1264_v4 = vld [vmem:[%s3322_s7] sm:$0xff] }
  0x27   : > { %2673 = vmatpush3.bf16.msra.mxu0 %v2670_v18  ;;  %v2738_v3 = vpack.c.bf16 %v1289_v1, %v1288_v0  ;;  %v1290_v5 = vld [vmem:[%s3077_s14 + $0x50] sm:$0xff]  ;;  %v1291_v6 = vld [vmem:[%s3077_s14 + $0x58] sm:$0xff]  ;;  %v1292_v8 = vld [vmem:[%s3077_s14 + $0x60] sm:$0xff] }
  0x28   : > { %2675 = vmatprep.subr.bf16.mxu0 %v2674_v24  ;;  %2701 = vmatpush3.bf16.msra.mxu1 %v2698_v19  ;;  %v2742_v7 = vpack.c.bf16 %v1291_v6, %v1290_v5  ;;  %v1293_v9 = vld [vmem:[%s3077_s14 + $0x68] sm:$0xff]  ;;  %v1294_v11 = vld [vmem:[%s3077_s14 + $0x70] sm:$0xff]  ;;  %v1295_v12 = vld [vmem:[%s3077_s14 + $0x78] sm:$0xff]  ;;  %s383_s14 = scalar_lea.vmem [#allocation3], %s2264_s19 }
  0x29   : > { %2703 = vmatprep.subr.bf16.mxu1 %v2702_v25  ;;  %v2746_v10 = vpack.c.bf16 %v1293_v9, %v1292_v8  ;;  %v2750_v13 = vpack.c.bf16 %v1295_v12, %v1294_v11  ;;  %v1265_v14 = vld [vmem:[%s3322_s7 + $0x8] sm:$0xff]  ;;  %v1266_v15 = vld [vmem:[%s3322_s7 + $0x10] sm:$0xff]  ;;  %v1267_v16 = vld [vmem:[%s3322_s7 + $0x18] sm:$0xff]  ;;  %s2174_s30 = sshll.u32 %s383_s14, 4  ;;  %s3270_s30 = int_to_ptr.vmem [resolvable:$true] %s2174_s30 }
  0x2a   : > { %v1268_v17 = vld [vmem:[%s3322_s7 + $0x20] sm:$0xff]  ;;  %v1269_v18 = vld [vmem:[%s3322_s7 + $0x28] sm:$0xff]  ;;  %v1270_v19 = vld [vmem:[%s3322_s7 + $0x30] sm:$0xff]  ;;  %s2839_s9 = scalar_lea.vmem %s3270_s30, 256  ;;  %p2846_p0 = scmp.lt.s32.totalorder %s3270_s30, %s2844_s29 }
  0x2b   : > { %2677 = vmatpush3.bf16.msra.mxu0 %v2674_v24  ;;  %v1271_v20 = vld [vmem:[%s3322_s7 + $0x38] sm:$0xff]  ;;  %v1272_v21 = vld [vmem:[%s3322_s7 + $0x40] sm:$0xff]  ;;  %v1273_v22 = vld [vmem:[%s3322_s7 + $0x48] sm:$0xff]  ;;  %p2840_p11 = scmp.ne.s32.totalorder %s3270_s30, %s2839_s9 }
  0x2c   : > { %2705 = vmatpush3.bf16.msra.mxu1 %v2702_v25  ;;  %2679 = vmatprep.subr.bf16.mxu0 %v2678_v36  ;;  %v1274_v23 = vld [vmem:[%s3322_s7 + $0x50] sm:$0xff]  ;;  %v1275_v24 = vld [vmem:[%s3322_s7 + $0x58] sm:$0xff]  ;;  %v1276_v25 = vld [vmem:[%s3322_s7 + $0x60] sm:$0xff] }
  0x2d   : > { %2707 = vmatprep.subr.bf16.mxu1 %v2706_v28  ;;  %v1277_v26 = vld [vmem:[%s3322_s7 + $0x68] sm:$0xff]  ;;  %v1278_v27 = vld [vmem:[%s3322_s7 + $0x70] sm:$0xff]  ;;  %v527_v29 = vld [vmem:[%s3319_s4] sm:$0xff]  ;;  %p2841_p12 = pnand %p2840_p11, %p3002_p5 }
  0x2e   : > { %2473 = vmatmul.mubr.msk.f32.vlgmr.msra.gmra.mrb[0].mxu0 %vm413_vm0, %v400_v31  ;;  %v528_v30 = vld [vmem:[%s3319_s4 + $0x8] sm:$0xff]  ;;  %v928_v46 = vld [vmem:[%s3321_s6] sm:$0xff]  ;;  %v2313_v6 = vld [vmem:[%s3323_s8 + $0x10] sm:$0xf] }
  0x2f   : > { %2475 = vmatprep.mubr.msk.f32.mxu0 %vm413_vm0, %v401_v32  ;;  %2681 = vmatpush3.bf16.msra.mxu0 %v2678_v36  ;;  %v2682_v31 = vpack.c.bf16 %v528_v30, %v527_v29  ;;  %v2305_v60 = vld [vmem:[%s3323_s8 + $0x8] sm:$0xf]  ;;  %v2309_v1 = vld [vmem:[%s3323_s8 + $0xc] sm:$0xf]  ;;  %v2321_v11 = vld [vmem:[%s3323_s8 + $0x18] sm:$0xf]  ;;  %p2842_p13 = pneg %p2841_p12 }
  0x30   : > { %2709 = vmatpush3.bf16.msra.mxu1 %v2706_v28  ;;  %v1279_v28 = vld [vmem:[%s3322_s7 + $0x78] sm:$0xff] }
  0x31   : > { %2711 = vmatprep.subr.bf16.mxu1 %v2710_v35  ;;  %2683 = vmatprep.subr.bf16.mxu0 %v2682_v31  ;;  %v2325_v12 = vld [vmem:[%s3323_s8 + $0x1c] sm:$0xf] }
  0x32   : > { %2476 = vmatmul.mubr.msk.f32.gmra.mrb[2].mxu0 %vm413_vm0, %v402_v39 }
  0x33   : > { %2478 = vmatprep.mubr.msk.f32.mxu0 %vm413_vm0, %v403_v40 }
  0x34   : > { %2713 = vmatpush3.bf16.msra.mxu1 %v2710_v35  ;;  %v2284_v35 = vld [vmem:[%s3319_s4 + $0x28] sm:$0xff] }
  0x35   : > { %2715 = vmatprep.subr.bf16.mxu1 %v2714_v41  ;;  %v2686_v38 = vpack.c.bf16 %v2284_v35, %v2283_v34 }
  0x36   : > { %2479 = vmatmul.mubr.msk.f32.gmra.mrb[4].mxu0 %vm413_vm0, %v404_v44 }
  0x38   : > { %2717 = vmatpush3.bf16.msra.mxu1 %v2714_v41  ;;  %v2287_v41 = vld [vmem:[%s3321_s6 + $0x8] sm:$0xff] }
  0x39   : > { %2719 = vmatprep.subr.bf16.mxu1 %v2718_v45 }
  0x3c   : > { %2721 = vmatpush3.bf16.msra.mxu1 %v2718_v45 }
  0x3d   : > { %2723 = vmatprep.subr.bf16.mxu1 %v2722_v48 }
  0x3f   : > { %2535 = vmatmul.mubr.f32.vlgmr.msra.gmra.mrb[0].mxu1 %v800_v51 }
  0x40   : > { %2725 = vmatpush3.bf16.msra.mxu1 %v2722_v48  ;;  %2537 = vmatprep.mubr.f32.mxu1 %v801_v52  ;;  %v2292_v48 = vld [vmem:[%s3321_s6 + $0x10] sm:$0xff]  ;;  %v2295_v52 = vld [vmem:[%s3321_s6 + $0x18] sm:$0xff] }
  0x41   : > { %2727 = vmatprep.subr.bf16.mxu1 %v2726_v53 }
  0x43   : > { %2538 = vmatmul.mubr.f32.gmra.mrb[2].mxu1 %v802_v56  ;;  %v1441_v56 = vld [vmem:[%s3323_s8] sm:$0xf] }
  0x44   : > { %2729 = vmatpush3.bf16.msra.mxu1 %v2726_v53  ;;  %2540 = vmatprep.mubr.f32.mxu1 %v803_v58  ;;  %v2298_v53 = vld [vmem:[%s3323_s8 + $0x4] sm:$0xf] }
  0x45   : > { %2731 = vmatprep.subr.bf16.mxu1 %v2730_v57 }
  0x47   : > { %2541 = vmatmul.mubr.f32.gmra.mrb[4].mxu1 %v804_v61 }
  0x48   : > { %2733 = vmatpush3.bf16.msra.mxu1 %v2730_v57  ;;  %2543 = vmatprep.mubr.f32.mxu1 %v805_v63 }
  0x49   : > { %2735 = vmatprep.subr.bf16.mxu1 %v2734_v62 }
  0x4b   : > { %2544 = vmatmul.mubr.f32.gmra.mrb[6].mxu1 %v806_v2 }
  0x4c   : > { %2737 = vmatpush3.bf16.msra.mxu1 %v2734_v62  ;;  %2598 = vmatprep.mubr.f32.mxu1 %v1264_v4 }
  0x4d   : > { %2739 = vmatprep.subr.bf16.mxu1 %v2738_v3 }
  0x50   : > { %2741 = vmatpush3.bf16.msra.mxu1 %v2738_v3 }
  0x51   : > { %2743 = vmatprep.subr.bf16.mxu1 %v2742_v7 }
  0x54   : > { %2745 = vmatpush3.bf16.msra.mxu1 %v2742_v7 }
  0x55   : > { %2747 = vmatprep.subr.bf16.mxu1 %v2746_v10 }
  0x58   : > { %2749 = vmatpush3.bf16.msra.mxu1 %v2746_v10  ;;  %v2317_v10 = vld [vmem:[%s3323_s8 + $0x14] sm:$0xf] }
  0x59   : > { %2751 = vmatprep.subr.bf16.mxu1 %v2750_v13 }
  0x5c   : > { %2753 = vmatpush3.bf16.msra.mxu1 %v2750_v13 }
  0x5f   : > { %2599 = vmatmul.mubr.f32.vlgmr.msra.gmra.mrb[8].mxu1 %v1265_v14 }
  0x60   : > { %2601 = vmatprep.mubr.f32.mxu1 %v1266_v15  ;;  %v782_v15 = vstv %s781_s11  ;;  %s2845_s11 = scalar_lea.vmem %s2844_s29, 512 }
  0x61   : > { %p2847_p1 = scmp.lt.s32.totalorder %s2845_s11, %s2839_s9 }
  0x63   : > { %2602 = vmatmul.mubr.f32.gmra.mrb[10].mxu1 %v1267_v16  ;;  %p2848_p2 = por %p2847_p1, %p2846_p0 }
  0x64   : > { %2604 = vmatprep.mubr.f32.mxu1 %v1268_v17 }
  0x65   : > { %p2849_p3 = pnand %p2848_p2, %p2842_p13 }
  0x67   : > { %2605 = vmatmul.mubr.f32.gmra.mrb[12].mxu1 %v1269_v18 }
  0x68   : > { %2607 = vmatprep.mubr.f32.mxu1 %v1270_v19 }
  0x6b   : > { %2608 = vmatmul.mubr.f32.gmra.mrb[14].mxu1 %v1271_v20 }
  0x6c   : > { %2610 = vmatprep.mubr.f32.mxu1 %v1272_v21 }
  0x6f   : > { %2611 = vmatmul.mubr.f32.gmra.mrb[16].mxu1 %v1273_v22 }
  0x70   : > { %2613 = vmatprep.mubr.f32.mxu1 %v1274_v23 }
  0x73   : > { %2614 = vmatmul.mubr.f32.gmra.mrb[18].mxu1 %v1275_v24 }
  0x74   : > { %2616 = vmatprep.mubr.f32.mxu1 %v1276_v25 }
  0x77   : > { %2617 = vmatmul.mubr.f32.gmra.mrb[20].mxu1 %v1277_v26 }
  0x78   : > { %2619 = vmatprep.mubr.f32.mxu1 %v1278_v27 }
  0x7b   : > { %2620 = vmatmul.mubr.f32.gmra.mrb[22].mxu1 %v1279_v28 }
 0x101   : > { %v2474_v32 = vpop.f32.mrb[0].mxu0 }
 0x102   : > { %v498_v33 = vpop.f32.mrb[1].mxu0 }
 0x105   : > { %v2477_v36 = vpop.f32.mrb[2].mxu0 }
 0x106   : > { %v508_v37 = vpop.f32.mrb[3].mxu0 }
 0x107   : > { %2485 = vmatprep.mubr.msk.f32.mxu0 %vm532_vm1, %v508_v37 }
 0x108   : > { %2486 = vmatmul.mubr.msk.f32.vlgmr.msra.gmra.mrb[6].mxu0 %vm532_vm1, %v2477_v36 }
 0x109   : > { %2685 = vmatpush3.bf16.msra.mxu0 %v2682_v31  ;;  %2492 = vmatprep.mubr.msk.f32.mxu0 %vm532_vm1, %v498_v33  ;;  %v2480_v39 = vpop.f32.mrb[4].mxu0 }
 0x10a   : > { %2687 = vmatprep.subr.bf16.mxu0 %v2686_v38  ;;  %v518_v40 = vpop.f32.mrb[5].mxu0 }
 0x110   : > { %2493 = vmatmul.mubr.msk.f32.vlgmr.msra.gmra.mrb[6].mxu0 %vm532_vm1, %v2474_v32 }
 0x111   : > { %2689 = vmatpush3.bf16.msra.mxu0 %v2686_v38  ;;  %2499 = vmatprep.mubr.msk.f32.mxu0 %vm532_vm1, %v518_v40 }
 0x112   : > { %v2536_v42 = vpop.f32.mrb[0].mxu1  ;;  %2546 = vmatprep.subr.mxu0 %v2287_v41 }
 0x113   : > { %v889_v43 = vpop.f32.mrb[1].mxu1 }
 0x116   : > { %v2539_v44 = vpop.f32.mrb[2].mxu1 }
 0x117   : > { %v899_v45 = vpop.f32.mrb[3].mxu1 }
 0x118   : > { %2500 = vmatmul.mubr.msk.f32.vlgmr.msra.gmra.mrb[6].mxu0 %vm532_vm1, %v2480_v39 }
 0x119   : > { %2547 = vmatpush3.msra.mxu0 %v2287_v41  ;;  %2548 = vmatprep.mubr.msk.f32.mxu0 %vm931_vm2, %v899_v45 }
 0x11a   : > { %2551 = vmatprep.subr.mxu0 %v928_v46  ;;  %v2542_v47 = vpop.f32.mrb[4].mxu1 }
 0x11b   : > { %v909_v49 = vpop.f32.mrb[5].mxu1 }
 0x11c   : > { %2549 = vmatmul.mubr.msk.f32.vlgmr.msra.gmra.mrb[8].mxu0 %vm931_vm2, %v2539_v44 }
 0x11d   : > { %2552 = vmatpush3.msra.mxu0 %v928_v46  ;;  %2553 = vmatprep.mubr.msk.f32.mxu0 %vm931_vm2, %v889_v43 }
 0x11e   : > { %2556 = vmatprep.subr.mxu0 %v2292_v48  ;;  %v2545_v50 = vpop.f32.mrb[6].mxu1 }
 0x11f   : > { %v919_v51 = vpop.f32.mrb[7].mxu1 }
 0x124   : > { %2554 = vmatmul.mubr.msk.f32.vlgmr.msra.gmra.mrb[8].mxu0 %vm931_vm2, %v2536_v42 }
 0x125   : > { %2557 = vmatpush3.msra.mxu0 %v2292_v48  ;;  %2558 = vmatprep.mubr.msk.f32.mxu0 %vm931_vm2, %v909_v49 }
 0x126   : > { %2561 = vmatprep.subr.mxu0 %v2295_v52 }
 0x12c   : > { %2559 = vmatmul.mubr.msk.f32.vlgmr.msra.gmra.mrb[8].mxu0 %vm931_vm2, %v2542_v47 }
 0x12d   : > { %2562 = vmatpush3.msra.mxu0 %v2295_v52  ;;  %2563 = vmatprep.mubr.msk.f32.mxu0 %vm931_vm2, %v919_v51 }
 0x12e   : > { %2622 = vmatprep.subr.msk.mxu0 %vm1451_vm3, %v2298_v53 }
 0x132   : > { %v2600_v54 = vpop.f32.mrb[8].mxu1 }
 0x133   : > { %v1362_v55 = vpop.f32.mrb[9].mxu1 }
 0x134   : > { %2564 = vmatmul.mubr.msk.f32.vlgmr.msra.gmra.mrb[8].mxu0 %vm931_vm2, %v2545_v50 }
 0x135   : > { %2623 = vmatpush3.msk.msra.mxu0 %vm1451_vm3, %v2298_v53 }
 0x136   : > { %v2603_v57 = vpop.f32.mrb[10].mxu1  ;;  %2627 = vmatprep.subr.msk.mxu0 %vm1451_vm3, %v1441_v56 }
 0x137   : > { %v1372_v58 = vpop.f32.mrb[11].mxu1 }
 0x138   : > { %2624 = vmatprep.mubr.msk.f32.mxu0 %vm1444_vm4, %v1372_v58 }
 0x13a   : > { %v2606_v59 = vpop.f32.mrb[12].mxu1 }
 0x13b   : > { %v1382_v61 = vpop.f32.mrb[13].mxu1 }
 0x13c   : > { %2625 = vmatmul.mubr.msk.f32.vlgmr.msra.gmra.mrb[8].mxu0 %vm1444_vm4, %v2603_v57 }
 0x13d   : > { %2628 = vmatpush3.msk.msra.mxu0 %vm1451_vm3, %v1441_v56  ;;  %2629 = vmatprep.mubr.msk.f32.mxu0 %vm1444_vm4, %v1362_v55 }
 0x13e   : > { %2632 = vmatprep.subr.msk.mxu0 %vm1451_vm3, %v2305_v60  ;;  %v2609_v62 = vpop.f32.mrb[14].mxu1 }
 0x13f   : > { %v1392_v63 = vpop.f32.mrb[15].mxu1 }
 0x142   : > { %v2612_v0 = vpop.f32.mrb[16].mxu1 }
 0x143   : > { %v1402_v2 = vpop.f32.mrb[17].mxu1 }
 0x144   : > { %2630 = vmatmul.mubr.msk.f32.vlgmr.msra.gmra.mrb[8].mxu0 %vm1444_vm4, %v2600_v54 }
 0x145   : > { %2633 = vmatpush3.msk.msra.mxu0 %vm1451_vm3, %v2305_v60  ;;  %2634 = vmatprep.mubr.msk.f32.mxu0 %vm1444_vm4, %v1382_v61 }
 0x146   : > { %2637 = vmatprep.subr.msk.mxu0 %vm1451_vm3, %v2309_v1  ;;  %v2615_v3 = vpop.f32.mrb[18].mxu1 }
 0x147   : > { %v1412_v4 = vpop.f32.mrb[19].mxu1 }
 0x14a   : > { %v2618_v5 = vpop.f32.mrb[20].mxu1 }
 0x14b   : > { %v1422_v7 = vpop.f32.mrb[21].mxu1 }
 0x14c   : > { %2635 = vmatmul.mubr.msk.f32.vlgmr.msra.gmra.mrb[8].mxu0 %vm1444_vm4, %v2606_v59 }
 0x14d   : > { %2638 = vmatpush3.msk.msra.mxu0 %vm1451_vm3, %v2309_v1  ;;  %2639 = vmatprep.mubr.msk.f32.mxu0 %vm1444_vm4, %v1392_v63 }
 0x14e   : > { %2642 = vmatprep.subr.msk.mxu0 %vm1451_vm3, %v2313_v6  ;;  %v2621_v8 = vpop.f32.mrb[22].mxu1 }
 0x14f   : > { %v1432_v9 = vpop.f32.mrb[23].mxu1 }
 0x154   : > { %2640 = vmatmul.mubr.msk.f32.vlgmr.msra.gmra.mrb[8].mxu0 %vm1444_vm4, %v2609_v62 }
 0x155   : > { %2643 = vmatpush3.msk.msra.mxu0 %vm1451_vm3, %v2313_v6  ;;  %2644 = vmatprep.mubr.msk.f32.mxu0 %vm1444_vm4, %v1402_v2 }
 0x156   : > { %2647 = vmatprep.subr.msk.mxu0 %vm1451_vm3, %v2317_v10 }
 0x15c   : > { %2645 = vmatmul.mubr.msk.f32.vlgmr.msra.gmra.mrb[8].mxu0 %vm1444_vm4, %v2612_v0 }
 0x15d   : > { %2648 = vmatpush3.msk.msra.mxu0 %vm1451_vm3, %v2317_v10  ;;  %2649 = vmatprep.mubr.msk.f32.mxu0 %vm1444_vm4, %v1412_v4 }
 0x15e   : > { %2652 = vmatprep.subr.msk.mxu0 %vm1451_vm3, %v2321_v11 }
 0x164   : > { %2650 = vmatmul.mubr.msk.f32.vlgmr.msra.gmra.mrb[8].mxu0 %vm1444_vm4, %v2615_v3 }
 0x165   : > { %2653 = vmatpush3.msk.msra.mxu0 %vm1451_vm3, %v2321_v11  ;;  %2654 = vmatprep.mubr.msk.f32.mxu0 %vm1444_vm4, %v1422_v7 }
 0x166   : > { %2657 = vmatprep.subr.msk.mxu0 %vm1451_vm3, %v2325_v12 }
 0x16c   : > { %2655 = vmatmul.mubr.msk.f32.vlgmr.msra.gmra.mrb[8].mxu0 %vm1444_vm4, %v2618_v5 }
 0x16d   : > { %2658 = vmatpush3.msk.msra.mxu0 %vm1451_vm3, %v2325_v12  ;;  %2659 = vmatprep.mubr.msk.f32.mxu0 %vm1444_vm4, %v1432_v9 }
 0x174   : > { %2660 = vmatmul.mubr.msk.f32.vlgmr.msra.gmra.mrb[8].mxu0 %vm1444_vm4, %v2621_v8 }
 0x1eb   : > { %v2501_v13 = vpop.f32.mrb[6].mxu0 }
 0x1ec   : > { %v770_v14 = vpop.f32.mrb[7].mxu0  ;;  %v784_v16 = vadd.f32 %v2501_v13, %v782_v15 }
 0x1ed   : > { %v783_v17 = vadd.f32 %v782_v15, %v770_v14 }
 0x1ee   : > { %v786_v18 = vsub.f32 0.0, %v784_v16 }
 0x1ef   : > { %v785_v19 = vsub.f32 0.0, %v783_v17 }
 0x1f0   : > { %v789_v20 = vmul.f32 1.442695, %v786_v18 }
 0x1f1   : > { %v787_v21 = vmul.f32 1.442695, %v785_v19 }
 0x1f2   : > { %2823 = vpow2.f32 %v789_v20 }
 0x1f3   : > { %2825 = vpow2.f32 %v787_v21 }
 0x1fc   : > { %v2824_v22 = vpop.eup %2823 }
 0x1fd   : > { %v2826_v23 = vpop.eup %2825  ;;  %v792_v24 = vadd.f32 1.0, %v2824_v22 }
 0x1fe   : > { %v791_v25 = vadd.f32 1.0, %v2826_v23 }
 0x1ff   : > { %2827 = vrcp.f32 %v792_v24 }
 0x200   : > { %2829 = vrcp.f32 %v791_v25 }
 0x209   : > { %v2828_v26 = vpop.eup %2827 }
 0x20a   : > { %v2830_v27 = vpop.eup %2829  ;;  %v798_v28 = vmul.f32 %v2828_v26, %v784_v16 }
 0x20b   : > { %v797_v30 = vmul.f32 %v2830_v27, %v783_v17 }
 0x247   : > { %v2661_v29 = vpop.f32.mrb[8].mxu0 }
 0x248   : > { %v2754_v31 = vadd.f32 %v2661_v29, %v798_v28  ;;  %v2131_v32 = vpop.f32.mrb[9].mxu0 }
 0x249   : > { %v2755_v33 = vadd.f32 %v2131_v32, %v797_v30 }
 0x24a   : > { %v2147_v34 = vsub.f32 0.0, %v2754_v31 }
 0x24b   : > { %v2146_v35 = vsub.f32 0.0, %v2755_v33 }
 0x24c   : > { %v2150_v36 = vmul.f32 1.442695, %v2147_v34 }
 0x24d   : > { %v2148_v37 = vmul.f32 1.442695, %v2146_v35 }
 0x24e   : > { %2831 = vpow2.f32 %v2150_v36 }
 0x24f   : > { %2833 = vpow2.f32 %v2148_v37 }
 0x258   : > { %v2832_v38 = vpop.eup %2831 }
 0x259   : > { %v2834_v39 = vpop.eup %2833  ;;  %v2153_v40 = vadd.f32 1.0, %v2832_v38 }
 0x25a   : > { %v2152_v41 = vadd.f32 1.0, %v2834_v39 }
 0x25b   : > { %2835 = vrcp.f32 %v2153_v40 }
 0x25c   : > { %2837 = vrcp.f32 %v2152_v41 }
 0x265   : > { %v2836_v42 = vpop.eup %2835 }
 0x266   : > { %v2838_v43 = vpop.eup %2837  ;;  %2159 = vst.msk [vmem:[%s383_s14 + $0x8] sm:$0xff] %vm532_vm1, %v2836_v42 }
 0x267   : > { %2158 = vst.msk [vmem:[%s383_s14] sm:$0xff] %vm532_vm1, %v2838_v43 }
 0x268   : > { %2852 = shalt.err (!%p2849_p3)
}
 0x269   : > { %s2853_s13 = scalar_lea.hbm %s3268_s22, 256  ;;  %s2857_s14 = scalar_lea.hbm %s3325_s10, 512 }
 0x26a   : > { %p2854_p4 = scmp.ne.s32.totalorder %s3268_s22, %s2853_s13  ;;  %p2858_p9 = scmp.lt.u32.totalorder %s3268_s22, %s3325_s10 }
 0x26b   : > { %p2859_p10 = scmp.lt.u32.totalorder %s2857_s14, %s2853_s13  ;;  %p2861_p12 = scmp.lt.u32.totalorder %s2853_s13, %s3268_s22 }
 0x26c   : > { %p2855_p7 = pnand %p2854_p4, %p3002_p5 }
 0x26d   : > { %p2860_p11 = por %p2859_p10, %p2858_p9 }
 0x26e   : > { %p2856_p8 = pneg %p2855_p7 }
 0x26f   : > { %p2862_p13 = por %p2861_p12, %p2860_p11 }
 0x271   : > { %p2863_p0 = pnand %p2862_p13, %p2856_p8 }
 0x273   : > { %2866 = shalt.err (!%p2863_p0)
}
 0x274   : > { %s2904_s9 = smov 128   ;;  %s2905_s28 = smov 8  }
 0x275   : > { %2782 = dma.vmem_to_hbm [thread:$0]  (%p3002_p5), %s3270_s30, 256, %s3268_s22, %s3274_s27, %s2904_s9, %s2904_s9, %s2905_s28  }
 0x276 PF: > { %p2788_p1 = scmp.ge.s32.totalorder %s2901_s18, 2  ;;  %s2189_s29 = sand.u32 1, %s2889_s15  }
 0x277   : > { %s2190_s11 = scalar_lea.sflag [#allocation4], %s2189_s29 }
 0x278   : > { %p2785_p2 = pnand %p2788_p1, %p3006_p6 }
 0x27a   : > { %2884 = dma.done.wait (!%p2785_p2), %s2190_s11, 256  }
 0x27b   : > { %2886 = vsyncadd (!%p2785_p2), %s2190_s11, 4294967040  ;;  %p21_p3 = scmp.ge.s32.totalorder %s2989_s20, 4   ;;  %s3328_s15 = smov %s2893_s16 }
 0x27c   : > { %s3329_s16 = smov %s2897_s17  ;;  %s3330_s17 = smov %s3000_s23 }
 0x27d   : > { %s3331_s18 = smov %s2989_s20  ;;  %23 = sbr.rel (!%p21_p3) target bundleno = 5 (0x5), region = 113 }
 0x284   :  { %2195 = vsyncpa [#allocation4], 1 }
 0x285   :  { %2197 = vsyncpa [#allocation4 + $0x1], 1 }

</bundles_post_ra>
